<compile_context>
chip_gen: v7x
topology: tpu7x:2x2x1
jax: 0.10.0
libtpu: 0.0.40
codegen_flags: <defaults>
</compile_context>

<pallas_src>
import numpy as np
import jax
import jax.numpy as jnp
from jax.experimental import pallas as pl
from jax.experimental.pallas import tpu as pltpu

_BN_EPS = 1e-5
_LANE = 128
_MAX_TILE_S = 2048                 # lanes per grid step; >=512 amortizes ~0.35us/step
_VMEM_LIMIT = 32 * 1024 * 1024     # raises v5e's 16 MiB default; <= 1/2 of v7x physical


def _round_up(x, m):
    return (x + m - 1) // m * m


# ---------------- pass 1: tiled global sum over flattened spatial axis -------
def _pool_sum_kernel(x_ref, sum_ref):
    # x_ref: (N, C, TILE_S); sum_ref: (N, C) f32 accumulator (resident across grid)
    @pl.when(pl.program_id(0) == 0)
    def _():
        sum_ref[...] = jnp.zeros_like(sum_ref)

    sum_ref[...] += jnp.sum(x_ref[...].astype(jnp.float32), axis=-1)


# ---------------- pass 3: tiled channel-wise rescale  out = x * scale --------
def _rescale_kernel(x_ref, scale_ref, out_ref):
    # x_ref/out_ref: (1, C, TILE_S); scale_ref: (1, C, 1) f32
    out_ref[...] = (x_ref[...].astype(jnp.float32) * scale_ref[...]).astype(out_ref.dtype)


def senet_forward(x, w1, w2):
    """SENet forward pass.

    x : (N, C, D, H, W) input feature map
    w1: (Hf, C)  conv1 1x1x1 weight (out, in), no bias
    w2: (C, Hf)  conv2 1x1x1 weight (out, in), no bias
    Returns x * sigmoid(BN2(conv2(relu(BN1(conv1(avgpool(x))))))) with
    training-mode BatchNorm (batch statistics, gamma=1, beta=0).
    """
    N, C, D, H, W = x.shape
    S = D * H * W

    # Lane-dense tiling: TILE_S is a multiple of 128, S zero-padded up to it.
    tile_s = min(_MAX_TILE_S, _round_up(S, _LANE))
    s_pad = _round_up(S, tile_s)
    n_s_tiles = s_pad // tile_s

    x3 = x.reshape(N, C, S)
    if s_pad != S:
        x3 = jnp.pad(x3, ((0, 0), (0, 0), (0, s_pad - S)))

    # ---- pass 1: global average pool (sum accumulated over S-tiles) ---------
    # VMEM/step: x tile N*C*tile_s*4B (double-buffered) + (N,C) accumulator.
    sums = pl.pallas_call(
        _pool_sum_kernel,
        out_shape=jax.ShapeDtypeStruct((N, C), jnp.float32),
        grid=(n_s_tiles,),
        in_specs=[pl.BlockSpec((N, C, tile_s), lambda k: (0, 0, k))],
        out_specs=pl.BlockSpec((N, C), lambda k: (0, 0)),
        compiler_params=pltpu.CompilerParams(
            dimension_semantics=("arbitrary",),          # reduction axis
            vmem_limit_bytes=_VMEM_LIMIT),
    )(x3)

    # ---- pass 2: squeeze / excite scale (tiny; plain JAX per perf review) ---
    pooled = sums / jnp.float32(S)                                    # (N, C)
    h = jnp.dot(pooled, w1.T, preferred_element_type=jnp.float32)     # (N, Hf)
    mu1 = jnp.mean(h, axis=0, keepdims=True)
    var1 = jnp.mean((h - mu1) ** 2, axis=0, keepdims=True)            # biased var
    h = jnp.maximum((h - mu1) * jax.lax.rsqrt(var1 + _BN_EPS), 0.0)   # BN1 + ReLU
    s = jnp.dot(h, w2.T, preferred_element_type=jnp.float32)          # (N, C)
    mu2 = jnp.mean(s, axis=0, keepdims=True)
    var2 = jnp.mean((s - mu2) ** 2, axis=0, keepdims=True)
    s = (s - mu2) * jax.lax.rsqrt(var2 + _BN_EPS)                     # BN2
    scale3 = jax.nn.sigmoid(s)[:, :, None].astype(jnp.float32)        # (N, C, 1)

    # ---- pass 3: parallel rescale out = x * scale ----------------------------
    out3 = pl.pallas_call(
        _rescale_kernel,
        out_shape=jax.ShapeDtypeStruct((N, C, s_pad), x.dtype),
        grid=(N, n_s_tiles),
        in_specs=[
            pl.BlockSpec((1, C, tile_s), lambda n, k: (n, 0, k)),
            pl.BlockSpec((1, C, 1), lambda n, k: (n, 0, 0)),
        ],
        out_specs=pl.BlockSpec((1, C, tile_s), lambda n, k: (n, 0, k)),
        input_output_aliases={0: 0},                     # out aliases (padded) x
        compiler_params=pltpu.CompilerParams(
            dimension_semantics=("parallel", "parallel"),  # shards over 2 TCs on v7x
            vmem_limit_bytes=_VMEM_LIMIT),
    )(x3, scale3)

    if s_pad != S:
        out3 = out3[:, :, :S]
    return out3.reshape(N, C, D, H, W)


def senet_reference(x, w1, w2):
    """Pure-JAX reference mirroring the PyTorch forward (training-mode BN)."""
    N, C, D, H, W = x.shape
    pooled = jnp.mean(x.reshape(N, C, -1), axis=-1)                   # (N, C)
    h = pooled @ w1.T
    mu1 = jnp.mean(h, axis=0, keepdims=True)
    var1 = jnp.mean((h - mu1) ** 2, axis=0, keepdims=True)
    h = jnp.maximum((h - mu1) / jnp.sqrt(var1 + _BN_EPS), 0.0)
    s = h @ w2.T
    mu2 = jnp.mean(s, axis=0, keepdims=True)
    var2 = jnp.mean((s - mu2) ** 2, axis=0, keepdims=True)
    s = (s - mu2) / jnp.sqrt(var2 + _BN_EPS)
    scale = jax.nn.sigmoid(s)                                         # (N, C)
    return x * scale[:, :, None, None, None]


if __name__ == "__main__":
    # Module defaults: in_feature_maps=64, squeeze_ratio=16, pool=1 (avg), norm=True
    squeeze_ratio = 16
    key = jax.random.PRNGKey(0)
    senet = jax.jit(senet_forward)

    # Case 1: S = D*H*W already a multiple of 128
    N, C, D, H, W = 2, 64, 4, 8, 8
    hidden = max(2, int(np.ceil(C / squeeze_ratio)))                  # = 4
    kx, k1, k2 = jax.random.split(key, 3)
    x = jax.random.normal(kx, (N, C, D, H, W), dtype=jnp.float32)
    # kaiming_normal_ (a=0, fan_in): std = sqrt(2 / fan_in), kernel volume 1
    w1 = jax.random.normal(k1, (hidden, C), dtype=jnp.float32) * np.sqrt(2.0 / C)
    w2 = jax.random.normal(k2, (C, hidden), dtype=jnp.float32) * np.sqrt(2.0 / hidden)

    ref = senet_reference(x, w1, w2)
    out = senet(x, w1, w2)
    jax.block_until_ready(out)
    np.testing.assert_allclose(np.asarray(out), np.asarray(ref), rtol=1e-5, atol=1e-5)

    # Case 2: odd spatial size exercises the lane-padding path (S = 105)
    D2, H2, W2 = 3, 5, 7
    x2 = jax.random.normal(jax.random.PRNGKey(1), (N, C, D2, H2, W2), dtype=jnp.float32)
    ref2 = senet_reference(x2, w1, w2)
    out2 = senet(x2, w1, w2)
    jax.block_until_ready(out2)
    np.testing.assert_allclose(np.asarray(out2), np.asarray(ref2), rtol=1e-5, atol=1e-5)

    print("KERNEL_OK")
</pallas_src>

<mosaic_0001>
module attributes {stable_mosaic.version = 11 : i64} {
  func.func @_pool_sum_kernel(%arg0: i32, %arg1: memref<2x64x256xf32, #tpu.memory_space<vmem>>, %arg2: memref<2x64xf32, #tpu.memory_space<vmem>>) attributes {dimension_semantics = [#tpu.dimension_semantics<arbitrary>], iteration_bounds = array<i64: 1>, scalar_prefetch = 0 : i64, scratch_operands = 0 : i64, tpu.core_type = #tpu.core_type<tc>, window_params = [{transform_indices = @transform_0, window_bounds = array<i64: 2, 64, 256>}, {pipeline_mode = #tpu.pipeline_mode<synchronous>, transform_indices = @transform_1, window_bounds = array<i64: 2, 64>}]} {
    %c0_i32 = arith.constant 0 : i32
    %0 = arith.cmpi eq, %arg0, %c0_i32 : i32
    %1 = arith.extui %0 : i1 to i32
    %c0_i32_0 = arith.constant 0 : i32
    %2 = arith.cmpi ne, %1, %c0_i32_0 : i32
    scf.if %2 {
      %cst_7 = arith.constant 0.000000e+00 : f32
      %8 = vector.broadcast %cst_7 : f32 to vector<2x64xf32>
      %c0_8 = arith.constant 0 : index
      %c0_9 = arith.constant 0 : index
      %9 = vector.load %arg2[%c0_8, %c0_9] : memref<2x64xf32, #tpu.memory_space<vmem>>, vector<2x64xf32>
      tpu.vector_store %arg2[%c0_8, %c0_9], %8 {strides = array<i32>} : memref<2x64xf32, #tpu.memory_space<vmem>>, vector<2x64xf32>,
    } else {
    }
    %c0 = arith.constant 0 : index
    %c0_1 = arith.constant 0 : index
    %3 = vector.load %arg2[%c0, %c0_1] : memref<2x64xf32, #tpu.memory_space<vmem>>, vector<2x64xf32>
    %c0_2 = arith.constant 0 : index
    %c0_3 = arith.constant 0 : index
    %c0_4 = arith.constant 0 : index
    %4 = vector.load %arg1[%c0_2, %c0_3, %c0_4] : memref<2x64x256xf32, #tpu.memory_space<vmem>>, vector<2x64x256xf32>
    %cst = arith.constant dense<0.000000e+00> : vector<2x64xf32>
    %5 = vector.multi_reduction <add>, %4, %cst [2] : vector<2x64x256xf32> to vector<2x64xf32>
    %6 = arith.addf %3, %5 : vector<2x64xf32>
    %c0_5 = arith.constant 0 : index
    %c0_6 = arith.constant 0 : index
    %7 = vector.load %arg2[%c0_5, %c0_6] : memref<2x64xf32, #tpu.memory_space<vmem>>, vector<2x64xf32>
    tpu.vector_store %arg2[%c0_5, %c0_6], %6 {strides = array<i32>} : memref<2x64xf32, #tpu.memory_space<vmem>>, vector<2x64xf32>,
    return
  }
  func.func @transform_0(%arg0: i32) -> (i32, i32, i32) {
    %c0_i32 = arith.constant 0 : i32
    %c0_i32_0 = arith.constant 0 : i32
    %c0_i32_1 = arith.constant 0 : i32
    return %c0_i32, %c0_i32_0, %arg0 : i32, i32, i32
  }
  func.func @transform_1(%arg0: i32) -> (i32, i32) {
    %c0_i32 = arith.constant 0 : i32
    %c0_i32_0 = arith.constant 0 : i32
    %c0_i32_1 = arith.constant 0 : i32
    return %c0_i32, %c0_i32_0 : i32, i32
  }
}

module attributes {stable_mosaic.version = 11 : i64} {
  func.func @_rescale_kernel(%arg0: i32, %arg1: i32, %arg2: memref<1x64x256xf32, #tpu.memory_space<vmem>>, %arg3: memref<1x64x1xf32, #tpu.memory_space<vmem>>, %arg4: memref<1x64x256xf32, #tpu.memory_space<vmem>>) attributes {dimension_semantics = [#tpu.dimension_semantics<parallel>, #tpu.dimension_semantics<parallel>], iteration_bounds = array<i64: 2, 1>, scalar_prefetch = 0 : i64, scratch_operands = 0 : i64, tpu.core_type = #tpu.core_type<tc>, window_params = [{transform_indices = @transform_0, window_bounds = array<i64: 1, 64, 256>}, {transform_indices = @transform_1, window_bounds = array<i64: 1, 64, 1>}, {transform_indices = @transform_2, window_bounds = array<i64: 1, 64, 256>}]} {
    %c0 = arith.constant 0 : index
    %c0_0 = arith.constant 0 : index
    %c0_1 = arith.constant 0 : index
    %0 = vector.load %arg2[%c0, %c0_0, %c0_1] : memref<1x64x256xf32, #tpu.memory_space<vmem>>, vector<1x64x256xf32>
    %c0_2 = arith.constant 0 : index
    %c0_3 = arith.constant 0 : index
    %c0_4 = arith.constant 0 : index
    %1 = vector.load %arg3[%c0_2, %c0_3, %c0_4] : memref<1x64x1xf32, #tpu.memory_space<vmem>>, vector<1x64x1xf32>
    %2 = vector.broadcast %1 : vector<1x64x1xf32> to vector<1x64x256xf32>
    %3 = arith.mulf %0, %2 : vector<1x64x256xf32>
    %c0_5 = arith.constant 0 : index
    %c0_6 = arith.constant 0 : index
    %c0_7 = arith.constant 0 : index
    %4 = vector.load %arg4[%c0_5, %c0_6, %c0_7] : memref<1x64x256xf32, #tpu.memory_space<vmem>>, vector<1x64x256xf32>
    tpu.vector_store %arg4[%c0_5, %c0_6, %c0_7], %3 {strides = array<i32>} : memref<1x64x256xf32, #tpu.memory_space<vmem>>, vector<1x64x256xf32>,
    return
  }
  func.func @transform_0(%arg0: i32, %arg1: i32) -> (i32, i32, i32) {
    %c0_i32 = arith.constant 0 : i32
    %c0_i32_0 = arith.constant 0 : i32
    return %arg0, %c0_i32, %arg1 : i32, i32, i32
  }
  func.func @transform_1(%arg0: i32, %arg1: i32) -> (i32, i32, i32) {
    %c0_i32 = arith.constant 0 : i32
    %c0_i32_0 = arith.constant 0 : i32
    %c0_i32_1 = arith.constant 0 : i32
    return %arg0, %c0_i32, %c0_i32_0 : i32, i32, i32
  }
  func.func @transform_2(%arg0: i32, %arg1: i32) -> (i32, i32, i32) {
    %c0_i32 = arith.constant 0 : i32
    %c0_i32_0 = arith.constant 0 : i32
    return %arg0, %c0_i32, %arg1 : i32, i32, i32
  }
}

</mosaic_0001>

<bundles_post_ra>
// kernel: senet_forward.2
= control target key start
LH: loop header
LB: loop body
LE: loop exit
PB: predicated region body
PF: predicated region fallthrough
CT: control target
= control target key end

     0   :  { %vm12_vm0 = vcmask 517120   ;;  %v216_v48 = vmov 0.0   ;;  %v111_v53 = vlaneseq  ;;  %vm122_vm1 = vcmask 130112   ;;  %s344_s0 = inlined_call_operand.vmem [shape: f32[2,64,256], index: 0, kind: input, shape index: {}]   ;;  %s345_s1 = inlined_call_operand.vmem [shape: f32[2,64], index: 1, kind: output, shape index: {}]  }
   0x1   :  { %v31_v0 = vld [vmem:[%s344_s0 + $0x80] sm:$0xff]  ;;  %v32_v1 = vld [vmem:[%s344_s0 + $0x88] sm:$0xff]  ;;  %v33_v5 = vld [vmem:[%s344_s0 + $0x90] sm:$0xff]  ;;  %13 = vst.msk [vmem:[%s345_s1] sm:$0x3] %vm12_vm0, %v216_v48  ;;  %vm129_vm2 = vcmask 195712  }
   0x2   :  { %v15_v2 = vld [vmem:[%s344_s0] sm:$0xff]  ;;  %v71_v3 = vadd.f32 %v32_v1, %v31_v0  ;;  %v16_v4 = vld [vmem:[%s344_s0 + $0x8] sm:$0xff]  ;;  %v34_v6 = vld [vmem:[%s344_s0 + $0x98] sm:$0xff]  ;;  %v112_v56 = vand.u32 127, %v111_v53  ;;  %v114_v61 = vshrl.u32 %v111_v53, 7  ;;  %vm136_vm3 = vcmask 261312  }
   0x3   :  { %v47_v7 = vadd.f32 %v16_v4, %v15_v2  ;;  %v17_v8 = vld [vmem:[%s344_s0 + $0x10] sm:$0xff]  ;;  %v18_v9 = vld [vmem:[%s344_s0 + $0x18] sm:$0xff]  ;;  %v74_v10 = vadd.f32 %v34_v6, %v33_v5  ;;  %v35_v12 = vld [vmem:[%s344_s0 + $0xa0] sm:$0xff]  ;;  %vm143_vm4 = vcmask 326912   ;;  %vm150_vm5 = vcmask 392512  }
   0x4   :  { %72 = vadd.xlane.f32.xlu1 %v71_v3  ;;  %v50_v11 = vadd.f32 %v18_v9, %v17_v8  ;;  %v36_v13 = vld [vmem:[%s344_s0 + $0xa8] sm:$0xff]  ;;  %v19_v14 = vld [vmem:[%s344_s0 + $0x20] sm:$0xff]  ;;  %v37_v18 = vld [vmem:[%s344_s0 + $0xb0] sm:$0xff]  ;;  %v117_v58 = vadd.s32 4294967288, %v112_v56  ;;  %v124_v60 = vadd.s32 4294967280, %v112_v56  ;;  %v131_v62 = vadd.s32 4294967272, %v112_v56 }
   0x5   :  { %48 = vadd.xlane.f32.xlu0 %v47_v7  ;;  %v20_v15 = vld [vmem:[%s344_s0 + $0x28] sm:$0xff]  ;;  %v77_v16 = vadd.f32 %v36_v13, %v35_v12  ;;  %v38_v19 = vld [vmem:[%s344_s0 + $0xb8] sm:$0xff]  ;;  %v21_v20 = vld [vmem:[%s344_s0 + $0x30] sm:$0xff]  ;;  %v138_v63 = vadd.s32 4294967264, %v112_v56  ;;  %v145_v3 = vadd.s32 4294967256, %v112_v56  ;;  %v152_v5 = vadd.s32 4294967248, %v112_v56 }
   0x6   :  { %v53_v17 = vadd.f32 %v20_v15, %v19_v14  ;;  %v22_v21 = vld [vmem:[%s344_s0 + $0x38] sm:$0xff]  ;;  %v80_v22 = vadd.f32 %v38_v19, %v37_v18  ;;  %v39_v24 = vld [vmem:[%s344_s0 + $0xc0] sm:$0xff]  ;;  %v40_v25 = vld [vmem:[%s344_s0 + $0xc8] sm:$0xff]  ;;  %v120_v1 = vsub.s32 %v117_v58, %v114_v61  ;;  %v127_v4 = vsub.s32 %v124_v60, %v114_v61 }
   0x7   :  { %v56_v23 = vadd.f32 %v22_v21, %v21_v20  ;;  %v23_v26 = vld [vmem:[%s344_s0 + $0x40] sm:$0xff]  ;;  %v24_v27 = vld [vmem:[%s344_s0 + $0x48] sm:$0xff]  ;;  %v83_v28 = vadd.f32 %v40_v25, %v39_v24  ;;  %v41_v30 = vld [vmem:[%s344_s0 + $0xd0] sm:$0xff]  ;;  %v115_v6 = vsub.s32 %v112_v56, %v114_v61  ;;  %v134_v7 = vsub.s32 %v131_v62, %v114_v61 }
   0x8   :  { %75 = vadd.xlane.f32.xlu1 %v74_v10  ;;  %v59_v29 = vadd.f32 %v24_v27, %v23_v26  ;;  %v42_v31 = vld [vmem:[%s344_s0 + $0xd8] sm:$0xff]  ;;  %v25_v32 = vld [vmem:[%s344_s0 + $0x50] sm:$0xff]  ;;  %v43_v36 = vld [vmem:[%s344_s0 + $0xe0] sm:$0xff]  ;;  %v141_v8 = vsub.s32 %v138_v63, %v114_v61  ;;  %v159_v13 = vadd.s32 4294967240, %v112_v56  ;;  %vm157_vm6 = vcmask 458112  }
   0x9   :  { %51 = vadd.xlane.f32.xlu0 %v50_v11  ;;  %v26_v33 = vld [vmem:[%s344_s0 + $0x58] sm:$0xff]  ;;  %v86_v34 = vadd.f32 %v42_v31, %v41_v30  ;;  %v44_v37 = vld [vmem:[%s344_s0 + $0xe8] sm:$0xff]  ;;  %v27_v38 = vld [vmem:[%s344_s0 + $0x60] sm:$0xff]  ;;  %v148_v11 = vsub.s32 %v145_v3, %v114_v61  ;;  %vm164_vm7 = vcmask 523712   ;;  %vm205_vm8 = vcmask 1041409  }
   0xa   :  { %v62_v35 = vadd.f32 %v26_v33, %v25_v32  ;;  %v28_v39 = vld [vmem:[%s344_s0 + $0x68] sm:$0xff]  ;;  %v89_v40 = vadd.f32 %v44_v37, %v43_v36  ;;  %v45_v42 = vld [vmem:[%s344_s0 + $0xf0] sm:$0xff]  ;;  %v46_v43 = vld [vmem:[%s344_s0 + $0xf8] sm:$0xff] }
   0xb   :  { %v65_v41 = vadd.f32 %v28_v39, %v27_v38  ;;  %v29_v44 = vld [vmem:[%s344_s0 + $0x70] sm:$0xff]  ;;  %v30_v45 = vld [vmem:[%s344_s0 + $0x78] sm:$0xff]  ;;  %v92_v46 = vadd.f32 %v46_v43, %v45_v42  ;;  %v14_v48 = vld [vmem:[%s345_s1] sm:$0x3] }
   0xc   :  { %78 = vadd.xlane.f32.xlu1 %v77_v16  ;;  %v68_v47 = vadd.f32 %v30_v45, %v29_v44  ;;  %v155_v16 = vsub.s32 %v152_v5, %v114_v61 }
   0xd   :  { %54 = vadd.xlane.f32.xlu0 %v53_v17 }
  0x10   :  { %81 = vadd.xlane.f32.xlu1 %v80_v22 }
  0x11   :  { %57 = vadd.xlane.f32.xlu0 %v56_v23 }
  0x14   :  { %84 = vadd.xlane.f32.xlu1 %v83_v28  ;;  %v162_v28 = vsub.s32 %v159_v13, %v114_v61 }
  0x15   :  { %60 = vadd.xlane.f32.xlu0 %v59_v29 }
  0x18   :  { %87 = vadd.xlane.f32.xlu1 %v86_v34 }
  0x19   :  { %63 = vadd.xlane.f32.xlu0 %v62_v35 }
  0x1c   :  { %90 = vadd.xlane.f32.xlu1 %v89_v40 }
  0x1d   :  { %66 = vadd.xlane.f32.xlu0 %v65_v41 }
  0x20   :  { %93 = vadd.xlane.f32.xlu1 %v92_v46 }
  0x21   :  { %69 = vadd.xlane.f32.xlu0 %v68_v47 }
  0x91   :  { %v73_v49 = vpop.xlane.xlu1 %72 }
  0x92   :  { %v49_v50 = vpop.xlane.xlu0 %48  ;;  %v169_v17 = vrot.slane %v73_v49, %v115_v6 }
  0x93   :  { %v116_v20 = vrot.slane %v49_v50, %v115_v6 }
  0x95   :  { %v76_v51 = vpop.xlane.xlu1 %75 }
  0x96   :  { %v52_v52 = vpop.xlane.xlu0 %51  ;;  %v173_v10 = vrot.slane %v76_v51, %v120_v1 }
  0x97   :  { %v121_v14 = vrot.slane %v52_v52, %v120_v1 }
  0x98   :  { %v174_v24 = vsel %vm122_vm1, %v173_v10, %v169_v17 }
  0x99   :  { %v79_v54 = vpop.xlane.xlu1 %78  ;;  %v123_v29 = vsel %vm122_vm1, %v121_v14, %v116_v20 }
  0x9a   :  { %v55_v55 = vpop.xlane.xlu0 %54  ;;  %v178_v15 = vrot.slane %v79_v54, %v127_v4 }
  0x9b   :  { %v128_v18 = vrot.slane %v55_v55, %v127_v4 }
  0x9c   :  { %v179_v30 = vsel %vm129_vm2, %v178_v15, %v174_v24 }
  0x9d   :  { %v82_v57 = vpop.xlane.xlu1 %81  ;;  %v130_v33 = vsel %vm129_vm2, %v128_v18, %v123_v29 }
  0x9e   :  { %v58_v59 = vpop.xlane.xlu0 %57  ;;  %v183_v19 = vrot.slane %v82_v57, %v134_v7 }
  0x9f   :  { %v135_v21 = vrot.slane %v58_v59, %v134_v7 }
  0xa0   :  { %v184_v34 = vsel %vm136_vm3, %v183_v19, %v179_v30 }
  0xa1   :  { %v85_v0 = vpop.xlane.xlu1 %84  ;;  %v137_v36 = vsel %vm136_vm3, %v135_v21, %v130_v33 }
  0xa2   :  { %v61_v2 = vpop.xlane.xlu0 %60  ;;  %v188_v22 = vrot.slane %v85_v0, %v141_v8 }
  0xa3   :  { %v142_v25 = vrot.slane %v61_v2, %v141_v8 }
  0xa4   :  { %v189_v37 = vsel %vm143_vm4, %v188_v22, %v184_v34 }
  0xa5   :  { %v88_v9 = vpop.xlane.xlu1 %87  ;;  %v144_v39 = vsel %vm143_vm4, %v142_v25, %v137_v36 }
  0xa6   :  { %v64_v12 = vpop.xlane.xlu0 %63  ;;  %v193_v26 = vrot.slane %v88_v9, %v148_v11 }
  0xa7   :  { %v149_v31 = vrot.slane %v64_v12, %v148_v11 }
  0xa8   :  { %v194_v40 = vsel %vm150_vm5, %v193_v26, %v189_v37 }
  0xa9   :  { %v91_v23 = vpop.xlane.xlu1 %90  ;;  %v151_v43 = vsel %vm150_vm5, %v149_v31, %v144_v39 }
  0xaa   :  { %v67_v27 = vpop.xlane.xlu0 %66  ;;  %v198_v32 = vrot.slane %v91_v23, %v155_v16 }
  0xab   :  { %v156_v35 = vrot.slane %v67_v27, %v155_v16 }
  0xac   :  { %v199_v44 = vsel %vm157_vm6, %v198_v32, %v194_v40 }
  0xad   :  { %v94_v38 = vpop.xlane.xlu1 %93  ;;  %v158_v46 = vsel %vm157_vm6, %v156_v35, %v151_v43 }
  0xae   :  { %v203_v41 = vrot.slane %v94_v38, %v162_v28  ;;  %v70_v42 = vpop.xlane.xlu0 %69 }
  0xaf   :  { %v163_v45 = vrot.slane %v70_v42, %v162_v28 }
  0xb0   :  { %v204_v47 = vsel %vm164_vm7, %v203_v41, %v199_v44 }
  0xb1   :  { %v165_v49 = vsel %vm164_vm7, %v163_v45, %v158_v46 }
  0xb2   :  { %v206_v50 = vsel %vm205_vm8, %v204_v47, %v165_v49 }
  0xb3   :  { %v208_v51 = vadd.f32 %v206_v50, %v14_v48 }
  0xb5   :  { %210 = vst.msk [vmem:[%s345_s1] sm:$0x3] %vm12_vm0, %v208_v51 }

// kernel: senet_forward.3
= control target key start
LH: loop header
LB: loop body
LE: loop exit
PB: predicated region body
PF: predicated region fallthrough
CT: control target
= control target key end

     0   :  { %s481_s9 = smov 0   ;;  %s483_s10 = smov 0   ;;  %s539_s0 = inlined_call_operand.vmem [shape: f32[2,64,256], index: 0, kind: input, shape index: {}, may-alias: {0,2}]   ;;  %s540_s1 = inlined_call_operand.vmem [shape: f32[2,64,1], index: 1, kind: input, shape index: {}]   ;;  %s541_s2 = inlined_call_operand.vmem [shape: f32[2,64,256], index: 2, kind: output, shape index: {}, may-alias: {0,2}]  }
   0x1   :  { %s485_s11 = smov 0  }
   0x2 LB: > { %s24_s12 = sadd.s32 1, %s459_s10  ;;  %p402_p0 = scmp.ge.s32.totalorder %s463_s11, 1  ;;  %s463_s11 = sphi %s485_s11, %s12_s11   ;;  %s459_s10 = sphi %s483_s10, %s543_s10   ;;  %s455_s9 = sphi %s481_s9, %s542_s9  }
   0x3   : > { %p26_p1 = scmp.ge.s32.totalorder %s24_s12, 2  ;;  %p143_p2 = scmp.lt.s32.totalorder %s463_s11, 3 }
   0x5   : > { %s545_s12 = smov (%p26_p1, %s24_s12), 0  ;;  %p144_p3 = pnand %p402_p0, %p143_p2 }
   0x6   : > { %p179_p4 = scmp.lt.s32.totalorder (!%p144_p3), %s455_s9, 1  ;;  %v465_v0 = vmov (!%p144_p3), 0  }
   0x7   : > { %147 = sbr.rel (%p144_p3) target bundleno = 162 (0xa2), region = 28  ;;  %440 = vset.pattern.permute.xlu1 (!%p144_p3), %v465_v0  ;;  %439 = vset.pattern.permute.xlu0 (!%p144_p3), %v465_v0 }
   0xe   : > { %s547_s9 = smov (!%p179_p4, %s455_s9), 1 }
   0xf   : > { %s412_s13 = sshll.u32 %s547_s9, 6  ;;  %s411_s17 = sshll.u32 %s547_s9, 7 }
  0x10   : > { %s192_s16 = scalar_lea.vmem %s540_s1, %s412_s13  ;;  %s186_s20 = scalar_lea.vmem %s539_s0, %s411_s17 }
  0x11   : > { %v221_v1 = vld [vmem:[%s192_s16 + $0x10] sm:$0xff]  ;;  %v219_v2 = vld [vmem:[%s192_s16] sm:$0xff]  ;;  %v222_v3 = vld [vmem:[%s192_s16 + $0x18] sm:$0xff]  ;;  %s512_s23 = scalar_lea.vmem %s541_s2, %s411_s17 }
  0x12   : > { %239 = vperm.xlu1 %440, %v221_v1   ;;  %229 = vperm.xlu0 %439, %v219_v2   ;;  %v220_v4 = vld [vmem:[%s192_s16 + $0x8] sm:$0xff]  ;;  %v223_v6 = vld [vmem:[%s192_s16 + $0x20] sm:$0xff]  ;;  %v226_v7 = vld [vmem:[%s192_s16 + $0x38] sm:$0xff] }
  0x13   : > { %v224_v5 = vld [vmem:[%s192_s16 + $0x28] sm:$0xff]  ;;  %v225_v8 = vld [vmem:[%s192_s16 + $0x30] sm:$0xff]  ;;  %v207_v9 = vld [vmem:[%s186_s20 + $0x20] sm:$0xff] }
  0x14   : > { %v208_v10 = vld [vmem:[%s186_s20 + $0x28] sm:$0xff]  ;;  %v203_v11 = vld [vmem:[%s186_s20] sm:$0xff]  ;;  %v209_v13 = vld [vmem:[%s186_s20 + $0x30] sm:$0xff] }
  0x15   : > { %v204_v12 = vld [vmem:[%s186_s20 + $0x8] sm:$0xff]  ;;  %v210_v14 = vld [vmem:[%s186_s20 + $0x38] sm:$0xff]  ;;  %v205_v15 = vld [vmem:[%s186_s20 + $0x10] sm:$0xff] }
  0x16   : > { %244 = vperm.xlu1 %440, %v222_v3   ;;  %234 = vperm.xlu0 %439, %v220_v4   ;;  %v206_v16 = vld [vmem:[%s186_s20 + $0x18] sm:$0xff]  ;;  %v213_v17 = vld [vmem:[%s186_s20 + $0x50] sm:$0xff]  ;;  %v211_v19 = vld [vmem:[%s186_s20 + $0x40] sm:$0xff] }
  0x17   : > { %v214_v18 = vld [vmem:[%s186_s20 + $0x58] sm:$0xff]  ;;  %v212_v20 = vld [vmem:[%s186_s20 + $0x48] sm:$0xff]  ;;  %v217_v21 = vld [vmem:[%s186_s20 + $0x70] sm:$0xff] }
  0x18   : > { %v218_v24 = vld [vmem:[%s186_s20 + $0x78] sm:$0xff]  ;;  %v215_v25 = vld [vmem:[%s186_s20 + $0x60] sm:$0xff]  ;;  %v216_v26 = vld [vmem:[%s186_s20 + $0x68] sm:$0xff] }
  0x1a   : > { %254 = vperm.xlu1 %440, %v224_v5   ;;  %249 = vperm.xlu0 %439, %v223_v6  }
  0x1e   : > { %264 = vperm.xlu1 %440, %v226_v7   ;;  %259 = vperm.xlu0 %439, %v225_v8  }
  0x91   : > { %v240_v22 = vpop.permute.xlu1 %239  ;;  %v230_v23 = vpop.permute.xlu0 %229 }
  0x92   : > { %v271_v27 = vmul.f32 %v240_v22, %v207_v9  ;;  %v272_v28 = vmul.f32 %v240_v22, %v208_v10  ;;  %v267_v29 = vmul.f32 %v230_v23, %v203_v11  ;;  %v268_v30 = vmul.f32 %v230_v23, %v204_v12 }
  0x94   : > { %283 = vst [vmem:[%s512_s23] sm:$0xff] %v267_v29  ;;  %284 = vst [vmem:[%s512_s23 + $0x8] sm:$0xff] %v268_v30 }
  0x95   : > { %287 = vst [vmem:[%s512_s23 + $0x20] sm:$0xff] %v271_v27  ;;  %288 = vst [vmem:[%s512_s23 + $0x28] sm:$0xff] %v272_v28  ;;  %v245_v31 = vpop.permute.xlu1 %244  ;;  %v235_v32 = vpop.permute.xlu0 %234 }
  0x96   : > { %v273_v33 = vmul.f32 %v245_v31, %v209_v13  ;;  %v274_v34 = vmul.f32 %v245_v31, %v210_v14  ;;  %v269_v35 = vmul.f32 %v235_v32, %v205_v15  ;;  %v270_v36 = vmul.f32 %v235_v32, %v206_v16 }
  0x98   : > { %285 = vst [vmem:[%s512_s23 + $0x10] sm:$0xff] %v269_v35  ;;  %286 = vst [vmem:[%s512_s23 + $0x18] sm:$0xff] %v270_v36 }
  0x99   : > { %289 = vst [vmem:[%s512_s23 + $0x30] sm:$0xff] %v273_v33  ;;  %290 = vst [vmem:[%s512_s23 + $0x38] sm:$0xff] %v274_v34  ;;  %v255_v37 = vpop.permute.xlu1 %254  ;;  %v250_v38 = vpop.permute.xlu0 %249 }
  0x9a   : > { %v277_v39 = vmul.f32 %v255_v37, %v213_v17  ;;  %v278_v40 = vmul.f32 %v255_v37, %v214_v18  ;;  %v275_v41 = vmul.f32 %v250_v38, %v211_v19  ;;  %v276_v42 = vmul.f32 %v250_v38, %v212_v20 }
  0x9c   : > { %291 = vst [vmem:[%s512_s23 + $0x40] sm:$0xff] %v275_v41  ;;  %292 = vst [vmem:[%s512_s23 + $0x48] sm:$0xff] %v276_v42 }
  0x9d   : > { %293 = vst [vmem:[%s512_s23 + $0x50] sm:$0xff] %v277_v39  ;;  %294 = vst [vmem:[%s512_s23 + $0x58] sm:$0xff] %v278_v40  ;;  %v265_v43 = vpop.permute.xlu1 %264  ;;  %v260_v44 = vpop.permute.xlu0 %259 }
  0x9e   : > { %v281_v45 = vmul.f32 %v265_v43, %v217_v21  ;;  %v282_v46 = vmul.f32 %v265_v43, %v218_v24  ;;  %v279_v47 = vmul.f32 %v260_v44, %v215_v25  ;;  %v280_v48 = vmul.f32 %v260_v44, %v216_v26 }
  0xa0   : > { %295 = vst [vmem:[%s512_s23 + $0x60] sm:$0xff] %v279_v47  ;;  %296 = vst [vmem:[%s512_s23 + $0x68] sm:$0xff] %v280_v48 }
  0xa1   : > { %297 = vst [vmem:[%s512_s23 + $0x70] sm:$0xff] %v281_v45  ;;  %298 = vst [vmem:[%s512_s23 + $0x78] sm:$0xff] %v282_v46 }
  0xa2 PF: > { %s12_s11 = sadd.s32 1, %s463_s11   ;;  %s542_s9 = smov %s459_s10 }
  0xa3   : > { %p9_p5 = scmp.ge.s32.totalorder %s12_s11, 4   ;;  %s543_s10 = smov %s545_s12 }
  0xa5   :  { %11 = sbr.rel (!%p9_p5) target bundleno = 2 (0x2), region = 61 }

</bundles_post_ra>
